<compile_context>
chip_gen: v7x
topology: tpu7x:2x2x1
jax: 0.10.0
libtpu: 0.0.40
codegen_flags: <defaults>
</compile_context>

<pallas_src>
import functools

import jax
import jax.numpy as jnp
from jax.experimental import pallas as pl
from jax.experimental.pallas import tpu as pltpu


def _text_embeddings_kernel(
    ids_ref,        # SMEM  [N_pad]        int32  (scalar prefetch)
    pos_ids_ref,    # SMEM  [N_pad]        int32  (scalar prefetch)
    word_hbm,       # HBM   [V, Hp]        f32    (pl.ANY, manual DMA gather)
    pos_hbm,        # HBM   [P, Hp]        f32    (pl.ANY, manual DMA gather)
    type_ref,       # VMEM  [T, Hp]        f32
    tt_ref,         # VMEM  [tile_n, 1]    int32
    gamma_ref,      # VMEM  [1, Hp]        f32
    beta_ref,       # VMEM  [1, Hp]        f32
    out_ref,        # VMEM  [tile_n, Hp]   f32
    word_buf,       # VMEM scratch [tile_n, Hp] f32
    pos_buf,        # VMEM scratch [tile_n, Hp] f32
    sems,           # DMA semaphores (2, tile_n)
    *, valid_h, eps):
    tile_n, Hp = out_ref.shape
    V = word_hbm.shape[0]
    P = pos_hbm.shape[0]
    T = type_ref.shape[0]

    i = pl.program_id(0)
    base = i * tile_n

    # ---- issue per-token row gathers (word + position) for this tile ----
    @pl.loop(0, tile_n)
    def _issue(t):
        # Clamp ids so a bad / padded id can never DMA out of bounds.
        wid = jnp.maximum(jnp.minimum(ids_ref[base + t], V - 1), 0)
        pid = jnp.maximum(jnp.minimum(pos_ids_ref[base + t], P - 1), 0)
        pltpu.make_async_copy(word_hbm.at[pl.ds(wid, 1)],
                              word_buf.at[pl.ds(t, 1)],
                              sems.at[0, t]).start()
        pltpu.make_async_copy(pos_hbm.at[pl.ds(pid, 1)],
                              pos_buf.at[pl.ds(t, 1)],
                              sems.at[1, t]).start()

    # ---- token-type embedding: broadcast-select on the VPU (T is tiny) ----
    # Done between DMA issue and wait so it overlaps the row fetches.
    tt = tt_ref[...]                                    # (tile_n, 1) int32
    ttype = jnp.zeros((tile_n, Hp), jnp.float32)
    for t_idx in range(T):
        row = type_ref[pl.ds(t_idx, 1), :]              # (1, Hp)
        ttype = ttype + (tt == t_idx).astype(jnp.float32) * row

    # Lane mask so LayerNorm statistics only cover the valid hidden lanes.
    lane = jax.lax.broadcasted_iota(jnp.int32, (1, Hp), 1)
    hmask = (lane < valid_h).astype(jnp.float32)
    inv_h = 1.0 / float(valid_h)

    # ---- wait for all row gathers of this tile ----
    @pl.loop(0, tile_n)
    def _wait(t):
        pltpu.make_async_copy(word_hbm.at[pl.ds(0, 1)],
                              word_buf.at[pl.ds(t, 1)],
                              sems.at[0, t]).wait()
        pltpu.make_async_copy(pos_hbm.at[pl.ds(0, 1)],
                              pos_buf.at[pl.ds(t, 1)],
                              sems.at[1, t]).wait()

    # ---- sum + LayerNorm (padded lanes of the tables are zero) ----
    emb = word_buf[...] + pos_buf[...] + ttype          # (tile_n, Hp)

    mean = jnp.sum(emb, axis=-1, keepdims=True) * inv_h
    centered = (emb - mean) * hmask
    var = jnp.sum(centered * centered, axis=-1, keepdims=True) * inv_h
    norm = centered * jax.lax.rsqrt(var + eps)
    # Dropout (eval mode) is the identity.
    out_ref[...] = norm * gamma_ref[...] + beta_ref[...]


def text_embeddings(input_ids, token_type_ids=None, position_ids=None,
                    params=None, eps=1e-12, tile_n=None):
    """input_ids/token_type_ids/position_ids: int32 [B, S]. Returns [B, S, H]."""
    B, S = input_ids.shape
    word, pos_tab, type_tab = params["word"], params["pos"], params["type"]
    V, H = word.shape
    P = pos_tab.shape[0]
    T = type_tab.shape[0]

    # Module defaults: position_ids = arange, token_type_ids = zeros.
    if position_ids is None:
        position_ids = jnp.broadcast_to(jnp.arange(S, dtype=jnp.int32), (B, S))
    if token_type_ids is None:
        token_type_ids = jnp.zeros((B, S), dtype=jnp.int32)

    N = B * S
    if tile_n is None:
        tile_n = 128 if N >= 128 else 8          # >=8 f32 sublanes; 128 at scale
    n_tiles = pl.cdiv(N, tile_n)
    N_pad = n_tiles * tile_n
    Hp = pl.cdiv(H, 128) * 128                   # lane-dense (multiple of 128)

    def pad_tab(x):
        return jnp.pad(x.astype(jnp.float32), ((0, 0), (0, Hp - H)))

    word_p = pad_tab(word)
    pos_p = pad_tab(pos_tab)
    type_p = pad_tab(type_tab)
    gamma_p = pad_tab(params["gamma"].reshape(1, H))
    beta_p = pad_tab(params["beta"].reshape(1, H))

    ids_flat = jnp.pad(input_ids.astype(jnp.int32).reshape(N), (0, N_pad - N))
    pid_flat = jnp.pad(position_ids.astype(jnp.int32).reshape(N), (0, N_pad - N))
    tt_flat = jnp.pad(token_type_ids.astype(jnp.int32).reshape(N),
                      (0, N_pad - N)).reshape(N_pad, 1)

    kernel = functools.partial(_text_embeddings_kernel, valid_h=H, eps=eps)

    grid_spec = pltpu.PrefetchScalarGridSpec(
        num_scalar_prefetch=2,
        grid=(n_tiles,),
        in_specs=[
            pl.BlockSpec(memory_space=pl.ANY),                        # word table (HBM)
            pl.BlockSpec(memory_space=pl.ANY),                        # pos table  (HBM)
            pl.BlockSpec((T, Hp), lambda i, ids, pids: (0, 0)),       # type table (VMEM)
            pl.BlockSpec((tile_n, 1), lambda i, ids, pids: (i, 0)),   # token-type ids
            pl.BlockSpec((1, Hp), lambda i, ids, pids: (0, 0)),       # gamma
            pl.BlockSpec((1, Hp), lambda i, ids, pids: (0, 0)),       # beta
        ],
        out_specs=pl.BlockSpec((tile_n, Hp), lambda i, ids, pids: (i, 0)),
        scratch_shapes=[
            pltpu.VMEM((tile_n, Hp), jnp.float32),   # gathered word rows
            pltpu.VMEM((tile_n, Hp), jnp.float32),   # gathered position rows
            pltpu.SemaphoreType.DMA((2, tile_n)),
        ],
    )

    out_padded = pl.pallas_call(
        kernel,
        out_shape=jax.ShapeDtypeStruct((N_pad, Hp), jnp.float32),
        grid_spec=grid_spec,
        compiler_params=pltpu.CompilerParams(
            dimension_semantics=("parallel",),       # megacore-shardable row axis
            vmem_limit_bytes=32 * 1024 * 1024,
        ),
    )(ids_flat, pid_flat, word_p, pos_p, type_p, tt_flat, gamma_p, beta_p)

    return out_padded[:N, :H].reshape(B, S, H)


def _reference(input_ids, token_type_ids, position_ids, params, eps=1e-12):
    emb = (params["word"][input_ids]
           + params["type"][token_type_ids]
           + params["pos"][position_ids])
    mean = emb.mean(-1, keepdims=True)
    var = ((emb - mean) ** 2).mean(-1, keepdims=True)
    return (emb - mean) / jnp.sqrt(var + eps) * params["gamma"] + params["beta"]


if __name__ == "__main__":
    # Small synthetic config (consistent with the module's __init__ shapes).
    vocab_size = 64
    hidden_size = 32
    max_position_embeddings = 16
    type_vocab_size = 2
    pad_token_id = 0
    batch, seq = 2, 8

    key = jax.random.PRNGKey(0)
    k_word, k_pos, k_type, k_g, k_b, k_ids = jax.random.split(key, 6)

    word_tab = jax.random.normal(k_word, (vocab_size, hidden_size),
                                 jnp.float32) * 0.02
    # padding_idx row is zero-initialized, as in nn.Embedding(padding_idx=...).
    word_tab = word_tab.at[pad_token_id].set(0.0)
    pos_tab = jax.random.normal(k_pos, (max_position_embeddings, hidden_size),
                                jnp.float32) * 0.02
    type_tab = jax.random.normal(k_type, (type_vocab_size, hidden_size),
                                 jnp.float32) * 0.02
    gamma = 1.0 + 0.1 * jax.random.normal(k_g, (hidden_size,), jnp.float32)
    beta = 0.1 * jax.random.normal(k_b, (hidden_size,), jnp.float32)

    params = {"word": word_tab, "pos": pos_tab, "type": type_tab,
              "gamma": gamma, "beta": beta}

    input_ids = jax.random.randint(k_ids, (batch, seq), 0, vocab_size,
                                   dtype=jnp.int32)

    # Use module defaults (position_ids = arange, token_type_ids = zeros).
    out = text_embeddings(input_ids, params=params)
    out = jax.block_until_ready(out)

    position_ids = jnp.broadcast_to(jnp.arange(seq, dtype=jnp.int32),
                                    (batch, seq))
    token_type_ids = jnp.zeros((batch, seq), dtype=jnp.int32)
    ref = _reference(input_ids, token_type_ids, position_ids, params)

    assert out.shape == (batch, seq, hidden_size)
    assert jnp.allclose(out, ref, atol=1e-5, rtol=1e-5), "mismatch vs reference"

    print("KERNEL_OK")
</pallas_src>

<mosaic_0001>
module attributes {stable_mosaic.version = 11 : i64} {
  func.func @_text_embeddings_kernel(%arg0: i32, %arg1: memref<16xi32, #tpu.memory_space<smem>>, %arg2: memref<16xi32, #tpu.memory_space<smem>>, %arg3: memref<64x128xf32, #tpu.memory_space<any>>, %arg4: memref<16x128xf32, #tpu.memory_space<any>>, %arg5: memref<2x128xf32, #tpu.memory_space<vmem>>, %arg6: memref<8x1xi32, #tpu.memory_space<vmem>>, %arg7: memref<1x128xf32, #tpu.memory_space<vmem>>, %arg8: memref<1x128xf32, #tpu.memory_space<vmem>>, %arg9: memref<8x128xf32, #tpu.memory_space<vmem>>, %arg10: memref<8x128xf32, #tpu.memory_space<vmem>>, %arg11: memref<8x128xf32, #tpu.memory_space<vmem>>, %arg12: memref<2x8x!tpu.dma_semaphore, #tpu.memory_space<semaphore_mem>>) attributes {dimension_semantics = [#tpu.dimension_semantics<parallel>], iteration_bounds = array<i64: 2>, scalar_prefetch = 2 : i64, scratch_operands = 3 : i64, tpu.core_type = #tpu.core_type<tc>, window_params = [{}, {}, {pipeline_mode = #tpu.pipeline_mode<synchronous>, transform_indices = @transform_2, window_bounds = array<i64: 2, 128>}, {transform_indices = @transform_3, window_bounds = array<i64: 8, 1>}, {pipeline_mode = #tpu.pipeline_mode<synchronous>, transform_indices = @transform_4, window_bounds = array<i64: 1, 128>}, {pipeline_mode = #tpu.pipeline_mode<synchronous>, transform_indices = @transform_5, window_bounds = array<i64: 1, 128>}, {transform_indices = @transform_6, window_bounds = array<i64: 8, 128>}]} {
    %c8_i32 = arith.constant 8 : i32
    %0 = arith.muli %arg0, %c8_i32 : i32
    %c0_i32 = arith.constant 0 : i32
    %c8_i32_0 = arith.constant 8 : i32
    %1 = arith.addi %c0_i32, %c8_i32_0 : i32
    %c1_i32 = arith.constant 1 : i32
    scf.for %arg13 = %c0_i32 to %1 step %c1_i32  : i32 {
      %c1_i32_27 = arith.constant 1 : i32
      %57 = arith.muli %arg13, %c1_i32_27 : i32
      %c0_i32_28 = arith.constant 0 : i32
      %58 = arith.addi %c0_i32_28, %57 : i32
      %59 = arith.addi %0, %58 : i32
      %60 = arith.index_cast %59 : i32 to index
      %61 = memref.load %arg1[%60] : memref<16xi32, #tpu.memory_space<smem>>
      %c63_i32 = arith.constant 63 : i32
      %62 = arith.minsi %61, %c63_i32 : i32
      %c0_i32_29 = arith.constant 0 : i32
      %63 = arith.maxsi %62, %c0_i32_29 : i32
      %64 = arith.addi %0, %58 : i32
      %65 = arith.index_cast %64 : i32 to index
      %66 = memref.load %arg2[%65] : memref<16xi32, #tpu.memory_space<smem>>
      %c15_i32 = arith.constant 15 : i32
      %67 = arith.minsi %66, %c15_i32 : i32
      %c0_i32_30 = arith.constant 0 : i32
      %68 = arith.maxsi %67, %c0_i32_30 : i32
      %c0_i32_31 = arith.constant 0 : i32
      %c0_i32_32 = arith.constant 0 : i32
      %69 = tpu.memref_slice %arg3[%63, %c0_i32_32] : memref<64x128xf32, #tpu.memory_space<any>> -> memref<1x128xf32, #tpu.memory_space<any>>
      %c0_i32_33 = arith.constant 0 : i32
      %70 = tpu.memref_slice %arg10[%58, %c0_i32_33] : memref<8x128xf32, #tpu.memory_space<vmem>> -> memref<1x128xf32, #tpu.memory_space<vmem>>
      %71 = tpu.memref_slice %arg12[%c0_i32_31, %58] : memref<2x8x!tpu.dma_semaphore, #tpu.memory_space<semaphore_mem>> -> memref<1x1x!tpu.dma_semaphore, #tpu.memory_space<semaphore_mem>>
      %72 = tpu.memref_squeeze %71 : memref<1x1x!tpu.dma_semaphore, #tpu.memory_space<semaphore_mem>> -> memref<!tpu.dma_semaphore, #tpu.memory_space<semaphore_mem>>
      tpu.enqueue_dma source(%69 : memref<1x128xf32, #tpu.memory_space<any>>) target(%70 : memref<1x128xf32, #tpu.memory_space<vmem>>) target_semaphore(%72 : memref<!tpu.dma_semaphore, #tpu.memory_space<semaphore_mem>>)
      %c1_i32_34 = arith.constant 1 : i32
      %c0_i32_35 = arith.constant 0 : i32
      %73 = tpu.memref_slice %arg4[%68, %c0_i32_35] : memref<16x128xf32, #tpu.memory_space<any>> -> memref<1x128xf32, #tpu.memory_space<any>>
      %c0_i32_36 = arith.constant 0 : i32
      %74 = tpu.memref_slice %arg11[%58, %c0_i32_36] : memref<8x128xf32, #tpu.memory_space<vmem>> -> memref<1x128xf32, #tpu.memory_space<vmem>>
      %75 = tpu.memref_slice %arg12[%c1_i32_34, %58] : memref<2x8x!tpu.dma_semaphore, #tpu.memory_space<semaphore_mem>> -> memref<1x1x!tpu.dma_semaphore, #tpu.memory_space<semaphore_mem>>
      %76 = tpu.memref_squeeze %75 : memref<1x1x!tpu.dma_semaphore, #tpu.memory_space<semaphore_mem>> -> memref<!tpu.dma_semaphore, #tpu.memory_space<semaphore_mem>>
      tpu.enqueue_dma source(%73 : memref<1x128xf32, #tpu.memory_space<any>>) target(%74 : memref<1x128xf32, #tpu.memory_space<vmem>>) target_semaphore(%76 : memref<!tpu.dma_semaphore, #tpu.memory_space<semaphore_mem>>)
    }
    %c8_i32_1 = arith.constant 8 : i32
    %c0 = arith.constant 0 : index
    %c0_2 = arith.constant 0 : index
    %2 = vector.load %arg6[%c0, %c0_2] : memref<8x1xi32, #tpu.memory_space<vmem>>, vector<8x1xi32>
    %cst = arith.constant 0.000000e+00 : f32
    %3 = vector.broadcast %cst : f32 to vector<8x128xf32>
    %c0_3 = arith.constant 0 : index
    %c0_4 = arith.constant 0 : index
    %4 = vector.load %arg5[%c0_3, %c0_4] : memref<2x128xf32, #tpu.memory_space<vmem>>, vector<1x128xf32>
    %c0_i32_5 = arith.constant 0 : i32
    %5 = vector.broadcast %c0_i32_5 : i32 to vector<8x1xi32>
    %6 = arith.cmpi eq, %2, %5 : vector<8x1xi32>
    %7 = arith.extui %6 : vector<8x1xi1> to vector<8x1xi32>
    %8 = arith.sitofp %7 : vector<8x1xi32> to vector<8x1xf32>
    %9 = vector.broadcast %8 : vector<8x1xf32> to vector<8x128xf32>
    %10 = vector.broadcast %4 : vector<1x128xf32> to vector<8x128xf32>
    %11 = arith.mulf %9, %10 : vector<8x128xf32>
    %12 = arith.addf %3, %11 : vector<8x128xf32>
    %c1 = arith.constant 1 : index
    %c0_6 = arith.constant 0 : index
    %13 = vector.load %arg5[%c1, %c0_6] : memref<2x128xf32, #tpu.memory_space<vmem>>, vector<1x128xf32>
    %c1_i32_7 = arith.constant 1 : i32
    %14 = vector.broadcast %c1_i32_7 : i32 to vector<8x1xi32>
    %15 = arith.cmpi eq, %2, %14 : vector<8x1xi32>
    %16 = arith.extui %15 : vector<8x1xi1> to vector<8x1xi32>
    %17 = arith.sitofp %16 : vector<8x1xi32> to vector<8x1xf32>
    %18 = vector.broadcast %17 : vector<8x1xf32> to vector<8x128xf32>
    %19 = vector.broadcast %13 : vector<1x128xf32> to vector<8x128xf32>
    %20 = arith.mulf %18, %19 : vector<8x128xf32>
    %21 = arith.addf %12, %20 : vector<8x128xf32>
    %22 = tpu.iota {dimensions = array<i32: 1>} : vector<1x128xi32>
    %c32_i32 = arith.constant 32 : i32
    %23 = vector.broadcast %c32_i32 : i32 to vector<1x128xi32>
    %24 = arith.cmpi slt, %22, %23 : vector<1x128xi32>
    %25 = arith.extui %24 : vector<1x128xi1> to vector<1x128xi32>
    %26 = arith.sitofp %25 : vector<1x128xi32> to vector<1x128xf32>
    %c0_i32_8 = arith.constant 0 : i32
    %c8_i32_9 = arith.constant 8 : i32
    %27 = arith.addi %c0_i32_8, %c8_i32_9 : i32
    %c1_i32_10 = arith.constant 1 : i32
    scf.for %arg13 = %c0_i32_8 to %27 step %c1_i32_10  : i32 {
      %c1_i32_27 = arith.constant 1 : i32
      %57 = arith.muli %arg13, %c1_i32_27 : i32
      %c0_i32_28 = arith.constant 0 : i32
      %58 = arith.addi %c0_i32_28, %57 : i32
      %c0_i32_29 = arith.constant 0 : i32
      %c0_i32_30 = arith.constant 0 : i32
      %c0_i32_31 = arith.constant 0 : i32
      %59 = tpu.memref_slice %arg3[%c0_i32_30, %c0_i32_31] : memref<64x128xf32, #tpu.memory_space<any>> -> memref<1x128xf32, #tpu.memory_space<any>>
      %c0_i32_32 = arith.constant 0 : i32
      %60 = tpu.memref_slice %arg10[%58, %c0_i32_32] : memref<8x128xf32, #tpu.memory_space<vmem>> -> memref<1x128xf32, #tpu.memory_space<vmem>>
      %61 = tpu.memref_slice %arg12[%c0_i32_29, %58] : memref<2x8x!tpu.dma_semaphore, #tpu.memory_space<semaphore_mem>> -> memref<1x1x!tpu.dma_semaphore, #tpu.memory_space<semaphore_mem>>
      %62 = tpu.memref_squeeze %61 : memref<1x1x!tpu.dma_semaphore, #tpu.memory_space<semaphore_mem>> -> memref<!tpu.dma_semaphore, #tpu.memory_space<semaphore_mem>>
      tpu.wait_dma2 semaphore(%62 : memref<!tpu.dma_semaphore, #tpu.memory_space<semaphore_mem>>) src(%59 : memref<1x128xf32, #tpu.memory_space<any>>) dst(%60 : memref<1x128xf32, #tpu.memory_space<vmem>>)
      %c1_i32_33 = arith.constant 1 : i32
      %c0_i32_34 = arith.constant 0 : i32
      %c0_i32_35 = arith.constant 0 : i32
      %63 = tpu.memref_slice %arg4[%c0_i32_34, %c0_i32_35] : memref<16x128xf32, #tpu.memory_space<any>> -> memref<1x128xf32, #tpu.memory_space<any>>
      %c0_i32_36 = arith.constant 0 : i32
      %64 = tpu.memref_slice %arg11[%58, %c0_i32_36] : memref<8x128xf32, #tpu.memory_space<vmem>> -> memref<1x128xf32, #tpu.memory_space<vmem>>
      %65 = tpu.memref_slice %arg12[%c1_i32_33, %58] : memref<2x8x!tpu.dma_semaphore, #tpu.memory_space<semaphore_mem>> -> memref<1x1x!tpu.dma_semaphore, #tpu.memory_space<semaphore_mem>>
      %66 = tpu.memref_squeeze %65 : memref<1x1x!tpu.dma_semaphore, #tpu.memory_space<semaphore_mem>> -> memref<!tpu.dma_semaphore, #tpu.memory_space<semaphore_mem>>
      tpu.wait_dma2 semaphore(%66 : memref<!tpu.dma_semaphore, #tpu.memory_space<semaphore_mem>>) src(%63 : memref<1x128xf32, #tpu.memory_space<any>>) dst(%64 : memref<1x128xf32, #tpu.memory_space<vmem>>)
    }
    %c8_i32_11 = arith.constant 8 : i32
    %c0_12 = arith.constant 0 : index
    %c0_13 = arith.constant 0 : index
    %28 = vector.load %arg10[%c0_12, %c0_13] : memref<8x128xf32, #tpu.memory_space<vmem>>, vector<8x128xf32>
    %c0_14 = arith.constant 0 : index
    %c0_15 = arith.constant 0 : index
    %29 = vector.load %arg11[%c0_14, %c0_15] : memref<8x128xf32, #tpu.memory_space<vmem>>, vector<8x128xf32>
    %30 = arith.addf %28, %29 : vector<8x128xf32>
    %31 = arith.addf %30, %21 : vector<8x128xf32>
    %cst_16 = arith.constant dense<0.000000e+00> : vector<8xf32>
    %32 = vector.multi_reduction <add>, %31, %cst_16 [1] : vector<8x128xf32> to vector<8xf32>
    %33 = vector.shape_cast %32 : vector<8xf32> to vector<8x1xf32>
    %cst_17 = arith.constant 3.125000e-02 : f32
    %34 = vector.broadcast %cst_17 : f32 to vector<8x1xf32>
    %35 = arith.mulf %33, %34 : vector<8x1xf32>
    %36 = vector.broadcast %35 : vector<8x1xf32> to vector<8x128xf32>
    %37 = arith.subf %31, %36 : vector<8x128xf32>
    %38 = vector.broadcast %26 : vector<1x128xf32> to vector<8x128xf32>
    %39 = arith.mulf %37, %38 : vector<8x128xf32>
    %40 = arith.mulf %39, %39 : vector<8x128xf32>
    %cst_18 = arith.constant dense<0.000000e+00> : vector<8xf32>
    %41 = vector.multi_reduction <add>, %40, %cst_18 [1] : vector<8x128xf32> to vector<8xf32>
    %42 = vector.shape_cast %41 : vector<8xf32> to vector<8x1xf32>
    %cst_19 = arith.constant 3.125000e-02 : f32
    %43 = vector.broadcast %cst_19 : f32 to vector<8x1xf32>
    %44 = arith.mulf %42, %43 : vector<8x1xf32>
    %cst_20 = arith.constant 9.99999996E-13 : f32
    %45 = vector.broadcast %cst_20 : f32 to vector<8x1xf32>
    %46 = arith.addf %44, %45 : vector<8x1xf32>
    %47 = math.rsqrt %46 : vector<8x1xf32>
    %48 = vector.broadcast %47 : vector<8x1xf32> to vector<8x128xf32>
    %49 = arith.mulf %39, %48 : vector<8x128xf32>
    %c0_21 = arith.constant 0 : index
    %c0_22 = arith.constant 0 : index
    %50 = vector.load %arg7[%c0_21, %c0_22] : memref<1x128xf32, #tpu.memory_space<vmem>>, vector<1x128xf32>
    %51 = vector.broadcast %50 : vector<1x128xf32> to vector<8x128xf32>
    %52 = arith.mulf %49, %51 : vector<8x128xf32>
    %c0_23 = arith.constant 0 : index
    %c0_24 = arith.constant 0 : index
    %53 = vector.load %arg8[%c0_23, %c0_24] : memref<1x128xf32, #tpu.memory_space<vmem>>, vector<1x128xf32>
    %54 = vector.broadcast %53 : vector<1x128xf32> to vector<8x128xf32>
    %55 = arith.addf %52, %54 : vector<8x128xf32>
    %c0_25 = arith.constant 0 : index
    %c0_26 = arith.constant 0 : index
    %56 = vector.load %arg9[%c0_25, %c0_26] : memref<8x128xf32, #tpu.memory_space<vmem>>, vector<8x128xf32>
    tpu.vector_store %arg9[%c0_25, %c0_26], %55 {strides = array<i32>} : memref<8x128xf32, #tpu.memory_space<vmem>>, vector<8x128xf32>,
    return
  }
  func.func @transform_2(%arg0: i32, %arg1: memref<16xi32, #tpu.memory_space<smem>>, %arg2: memref<16xi32, #tpu.memory_space<smem>>) -> (i32, i32) {
    %c0_i32 = arith.constant 0 : i32
    %c0_i32_0 = arith.constant 0 : i32
    %c0_i32_1 = arith.constant 0 : i32
    return %c0_i32, %c0_i32_0 : i32, i32
  }
  func.func @transform_3(%arg0: i32, %arg1: memref<16xi32, #tpu.memory_space<smem>>, %arg2: memref<16xi32, #tpu.memory_space<smem>>) -> (i32, i32) {
    %c0_i32 = arith.constant 0 : i32
    %c0_i32_0 = arith.constant 0 : i32
    return %arg0, %c0_i32 : i32, i32
  }
  func.func @transform_4(%arg0: i32, %arg1: memref<16xi32, #tpu.memory_space<smem>>, %arg2: memref<16xi32, #tpu.memory_space<smem>>) -> (i32, i32) {
    %c0_i32 = arith.constant 0 : i32
    %c0_i32_0 = arith.constant 0 : i32
    %c0_i32_1 = arith.constant 0 : i32
    return %c0_i32, %c0_i32_0 : i32, i32
  }
  func.func @transform_5(%arg0: i32, %arg1: memref<16xi32, #tpu.memory_space<smem>>, %arg2: memref<16xi32, #tpu.memory_space<smem>>) -> (i32, i32) {
    %c0_i32 = arith.constant 0 : i32
    %c0_i32_0 = arith.constant 0 : i32
    %c0_i32_1 = arith.constant 0 : i32
    return %c0_i32, %c0_i32_0 : i32, i32
  }
  func.func @transform_6(%arg0: i32, %arg1: memref<16xi32, #tpu.memory_space<smem>>, %arg2: memref<16xi32, #tpu.memory_space<smem>>) -> (i32, i32) {
    %c0_i32 = arith.constant 0 : i32
    %c0_i32_0 = arith.constant 0 : i32
    return %arg0, %c0_i32 : i32, i32
  }
}

</mosaic_0001>

<bundles_post_ra>
// kernel: tpu_custom_call.1
= control target key start
LH: loop header
LB: loop body
LE: loop exit
PB: predicated region body
PF: predicated region fallthrough
CT: control target
= control target key end

     0   :  { %s1059_s0 = inlined_call_operand.vmem [shape: s32[16], index: 0, kind: input, shape index: {}]   ;;  %s1060_s2 = inlined_call_operand.hbm [shape: f32[64,128], index: 2, kind: input, shape index: {}]   ;;  %s1061_s3 = inlined_call_operand.vmem [shape: f32[16,128], index: 3, kind: input, shape index: {}]   ;;  %s1062_s4 = inlined_call_operand.vmem [shape: f32[2,128], index: 4, kind: input, shape index: {}]   ;;  %s1063_s5 = inlined_call_operand.vmem [shape: s32[16,1], index: 5, kind: input, shape index: {}]   ;;  %s1064_s6 = inlined_call_operand.vmem [shape: f32[1,128], index: 6, kind: input, shape index: {}]   ;;  %s1065_s7 = inlined_call_operand.vmem [shape: f32[1,128], index: 7, kind: input, shape index: {}]   ;;  %s1066_s8 = inlined_call_operand.hbm [shape: f32[16,128], index: 8, kind: output, shape index: {}]   ;;  %s1067_s1 = inlined_call_operand.vmem [shape: s32[16], index: 1, kind: input, shape index: {}]  }
   0x1   :  { %1074 = sst [smem:[#allocation23_spill]] %s1063_s5  ;;  %s13_s29 = sshll.u32 %s1059_s0, 4  ;;  %s14_s29 = int_to_ptr.vmem [resolvable:$true] %s13_s29 }
   0x2   :  { %s17_s10 = sshll.u32 %s1067_s1, 4  ;;  %s702_s11 = scalar_lea.vmem %s14_s29, 16  ;;  %s18_s10 = int_to_ptr.vmem [resolvable:$true] %s17_s10 }
   0x3   :  { %p703_p0 = scmp.ne.s32.totalorder %s14_s29, %s702_s11  ;;  %p707_p1 = scmp.lt.s32.totalorder %s14_s29, %s14_s29 }
   0x4   :  { %p708_p2 = scmp.lt.s32.totalorder %s702_s11, %s702_s11 }
   0x6   :  { %p709_p3 = por %p708_p2, %p707_p1 }
   0x8   :  { %p710_p4 = pnand %p709_p3, %p703_p0 }
   0xa   :  { %713 = shalt.err (!%p710_p4)  }
   0xb   :  { %s836_s12 = smov [#allocation6]   ;;  %s714_s13 = scalar_lea.vmem %s18_s10, 16 }
   0xc   :  { %16 = dma.vmem_to_smem %s14_s29, 16, %s836_s12, [#allocation5] }
   0xd   :  { %p715_p5 = scmp.ne.s32.totalorder %s18_s10, %s714_s13  ;;  %p719_p6 = scmp.lt.s32.totalorder %s18_s10, %s18_s10 }
   0xe   :  { %p720_p7 = scmp.lt.s32.totalorder %s714_s13, %s714_s13 }
  0x10   :  { %p721_p8 = por %p720_p7, %p719_p6 }
  0x12   :  { %p722_p9 = pnand %p721_p8, %p715_p5 }
  0x14   :  { %725 = shalt.err (!%p722_p9)  }
  0x15   :  { %s837_s0 = smov [#allocation7]  }
  0x16   :  { %20 = dma.vmem_to_smem %s18_s10, 16, %s837_s0, [#allocation5] }
  0x17   :  { %802 = dma.done.wait [#allocation5], 32 }
  0x18   :  { %803 = vsyncadd [#allocation5], 4294967264 }
  0x19   :  { %22 = sfence }
  0x1a   :  { %23 = vsyncpa [#allocation9], 0 }
  0x1b   :  { %25 = vsyncpa [#allocation9 + $0x1], 0  ;;  %s893_s1 = smov 0   ;;  %s895_s14 = smov 0  }
  0x1c   :  { %s897_s15 = smov 0   ;;  %s899_s16 = smov 0  }
  0x1d LB: > { %1075 = sst [smem:[#allocation19_spill]] %s822_s15  ;;  %s914_s17 = sadd.s32 4294967295, %s826_s16   ;;  %s826_s16 = sphi %s899_s16, %s1088_s16   ;;  %s822_s15 = sphi %s897_s15, %s1090_s15   ;;  %s818_s14 = sphi %s895_s14, %s1092_s14   ;;  %s814_s1 = sphi %s893_s1, %s1091_s1  }
  0x1e   : > { %s586_s18 = sadd.s32 4294967294, %s826_s16   ;;  %s918_s19 = sadd.s32 1, %s826_s16  }
  0x1f   : > { %1076 = sst [smem:[#allocation20_spill]] %s918_s19  ;;  %s127_s20 = sadd.s32 1, %s822_s15 }
  0x20   : > { %s124_s21 = ssub.s32 %s826_s16, %s918_s19  ;;  %p137_p10 = scmp.ne.s32.totalorder %s822_s15, %s818_s14 }
  0x21   : > { %p125_p11 = scmp.eq.s32.totalorder %s124_s21, 0  ;;  %p138_p12 = scmp.eq.s32.totalorder %s914_s17, 1 }
  0x22   : > { %p143_p13 = scmp.ne.s32.totalorder %s818_s14, %s814_s1  ;;  %p144_p0 = scmp.eq.s32.totalorder %s586_s18, 1 }
  0x23   : > { %s929_s22 = scalar_select %p125_p11, %s822_s15, %s127_s20  }
  0x24   : > { %p931_p1 = por %p138_p12, %p137_p10  ;;  %p935_p2 = por %p144_p0, %p143_p13 }
  0x25   : > { %1077 = sst [smem:[#allocation21_spill]] %s929_s22  ;;  %p589_p3 = scmp.ge.s32.totalorder %s826_s16, 1 }
  0x26   : > { %s1079_s24 = scalar_select %p935_p2, 1, 0 }
  0x27   : > { %p178_p4 = scmp.lt.s32.totalorder %s826_s16, 3 }
  0x28   : > { %1080 = sst [smem:[#allocation22_spill]] %s1079_s24 }
  0x29   : > { %p179_p5 = pnand %p589_p3, %p178_p4 }
  0x2a   : > { %s1068_s25 = sand.u32 (!%p179_p5), 1, %s818_s14   ;;  %p203_p6 = scmp.lt.s32.totalorder (!%p179_p5), %s914_s17, 1 }
  0x2b   : > { %182 = sbr.rel (%p179_p5) target bundleno = 568 (0x238), region = 36  ;;  %s945_s26 = sshll.u32 (!%p179_p5), %s1068_s25, 3 }
  0x2c   : > { %s1081_s5 = sld [smem:[#allocation23_spill]] (!%p179_p5)  ;;  %s955_s12 = smov (!%p179_p5), 0  }
  0x32   : > { %s204_s28 = scalar_select %p203_p6, %s914_s17, 1 }
  0x34   : > { %s591_s29 = sshll.u32 %s204_s28, 3 }
  0x35   : > { %s952_s10 = scalar_lea.vmem %s1081_s5, %s591_s29 }
  0x36 LB: >> { %s1082_s27 = sshll.u32 %s914_s17, 3  ;;  %s227_s20 = scalar_lea.vmem [#allocation2], %s830_s12  ;;  %s830_s12 = sphi %s955_s12, %s213_s12  }
  0x37   : >> { %s214_s13 = sadd.s32 %s830_s12, %s1082_s27  ;;  %s236_s21 = sshll.u32 %s227_s20, 4  ;;  %s969_s21 = int_to_ptr.vmem [resolvable:$true] %s236_s21 }
  0x38   : >> { %s215_s0 = sld [smem:[#allocation6 + %s214_s13]]  ;;  %s1069_s28 = scalar_lea.sflag [#allocation4], %s830_s12 }
  0x39   : >> { %s220_s18 = sld [smem:[#allocation7 + %s214_s13]]  ;;  %s967_s29 = scalar_lea.sflag %s1069_s28, 8 [#allocation4] }
  0x3a   : >> { %s728_s15 = scalar_lea.hbm %s1060_s2, 1024 }
  0x3e   : >> { %p216_p7 = scmp.lt.s32.totalorder %s215_s0, 63  ;;  %p593_p8 = scmp.gt.s32.totalorder %s215_s0, 0 }
  0x3f   : >> { %p221_p9 = scmp.lt.s32.totalorder %s220_s18, 15  ;;  %p598_p10 = scmp.gt.s32.totalorder %s220_s18, 0 }
  0x40   : >> { %s1094_s0 = smov (!%p216_p7, %s215_s0), 63 }
  0x41   : >> { %s1096_s18 = smov (!%p221_p9, %s220_s18), 15  ;;  %s1098_s0 = smov (!%p593_p8, %s1094_s0), 0 }
  0x42   : >> { %s1100_s18 = smov (!%p598_p10, %s1096_s18), 0  ;;  %s603_s30 = sshll.u32 %s1098_s0, 4 }
  0x43   : >> { %s226_s13 = scalar_lea.hbm %s1060_s2, %s603_s30  ;;  %s240_s11 = scalar_lea.vmem %s1061_s3, %s1100_s18 }
  0x44   : >> { %s726_s28 = scalar_lea.hbm %s226_s13, 16  ;;  %p729_p12 = scmp.lt.u32.totalorder %s226_s13, %s1060_s2 }
  0x45   : >> { %p727_p11 = scmp.ne.s32.totalorder %s226_s13, %s726_s28  ;;  %p730_p13 = scmp.lt.u32.totalorder %s728_s15, %s726_s28 }
  0x46   : >> { %p732_p3 = scmp.lt.u32.totalorder %s726_s28, %s226_s13 }
  0x47   : >> { %p731_p0 = por %p730_p13, %p729_p12 }
  0x49   : >> { %p733_p4 = por %p732_p3, %p731_p0 }
  0x4b   : >> { %p734_p5 = pnand %p733_p4, %p727_p11 }
  0x4d   : >> { %737 = shalt.err (!%p734_p5)  }
  0x4e   : >> { %s738_s25 = scalar_lea.vmem %s969_s21, 16  ;;  %s838_s27 = smov [#allocation2]  }
  0x4f   : >> { %p739_p6 = scmp.ne.s32.totalorder %s969_s21, %s738_s25  ;;  %s740_s0 = sshll.u32 %s838_s27, 4  ;;  %s741_s0 = int_to_ptr.vmem [resolvable:$false] %s740_s0 }
  0x50   : >> { %s742_s5 = scalar_lea.vmem %s741_s0, 128  ;;  %p743_p7 = scmp.lt.s32.totalorder %s969_s21, %s741_s0 }
  0x51   : >> { %p744_p8 = scmp.lt.s32.totalorder %s742_s5, %s738_s25 }
  0x53   : >> { %p745_p9 = por %p744_p8, %p743_p7 }
  0x55   : >> { %p746_p10 = pnand %p745_p9, %p739_p6 }
  0x57   : >> { %749 = shalt.err (!%p746_p10)  }
  0x58   : >> { %s1083_s15 = scalar_lea.sflag [#allocation4], %s830_s12  ;;  %v261_v0 = vld [vmem:[%s240_s11] sm:$0x1]  ;;  %s241_s19 = scalar_lea.vmem [#allocation3], %s830_s12 }
  0x59   : >> { %239 = dma.hbm_to_vmem [thread:$0]  %s226_s13, 16, %s969_s21, %s1083_s15  ;;  %262 = vst [vmem:[%s241_s19] sm:$0x1] %v261_v0 }
  0x5a   : >> { %287 = vsyncadd %s967_s29, 16  ;;  %s213_s12 = sadd.s32 1, %s830_s12  }
  0x5b   : >> { %p210_p11 = scmp.ge.s32.totalorder %s213_s12, 8  }
  0x5c   : > { %v288_v1 = vld [vmem:[%s952_s10] sm:$0xff] (%p210_p11)  ;;  %v319_v2 = vlaneseq (%p210_p11)  ;;  %v839_v3 = vmov (%p210_p11), 0   ;;  %v840_v4 = vmov (%p210_p11), 0.0   ;;  %s832_s10 = smov (%p210_p11), 0  }
  0x5d   : > { %212 = sbr.rel (!%p210_p11) target bundleno = 54 (0x36), region = 152  ;;  %694 = vset.pattern.permute.xlu0 (%p210_p11), %v839_v3  ;;  %vm290_vm0 = vcmp.eq.s32.totalorder (%p210_p11), %v288_v1, 0  ;;  %vm305_vm1 = vcmp.eq.s32.totalorder (%p210_p11), %v288_v1, 1  ;;  %v605_v10 = vld [vmem:[%s1062_s4] ss:$0 sm:$0xff] (%p210_p11) }
  0x5e   : > { %v604_v5 = vsel (%p210_p11), %vm290_vm0, 1.0, %v840_v4  ;;  %v606_v6 = vsel (%p210_p11), %vm305_vm1, 1.0, %v840_v4  ;;  %v320_v7 = vand.u32 (%p210_p11), 127, %v319_v2  ;;  %v607_v11 = vld [vmem:[%s1062_s4 + $0x1] ss:$0 sm:$0xff] (%p210_p11) }
  0x5f   : > { %v695_v8 = vpack.i.bf16 (%p210_p11), %v606_v6, %v604_v5 }
  0x60   : > { %vm321_vm2 = vcmp.lt.s32.totalorder (%p210_p11), %v320_v7, 32 }
  0x61   : > { %v608_v9 = vsel (%p210_p11), %vm321_vm2, 1.0, %v840_v4  ;;  %696 = vperm.xlu0 (%p210_p11), %694, %v695_v8  }
  0xe0   : > { %v697_v12 = vpop.permute.xlu0 %696 }
  0xe1   : > { %v699_v13 = vunpack.i.h.bf16 %v697_v12  ;;  %v698_v14 = vunpack.i.l.bf16 %v697_v12 }
  0xe3   : > { %v317_v15 = vmul.f32 %v699_v13, %v607_v11  ;;  %v302_v16 = vmul.f32 %v698_v14, %v605_v10 }
  0xe5   : > { %v318_v17 = vadd.f32 %v317_v15, %v302_v16 }
  0xe6 LB: >> { %s330_s18 = scalar_lea.sflag [#allocation4], %s834_s10  ;;  %s834_s10 = sphi %s832_s10, %s329_s10  }
  0xe7   : >> { %804 = dma.done.wait %s330_s18, 16 }
  0xe8   : >> { %805 = vsyncadd %s330_s18, 4294967280  ;;  %s538_s21 = scalar_lea.sflag %s330_s18, 8 [#allocation4] }
  0xe9   : >> { %806 = dma.done.wait %s538_s21, 16 }
  0xea   : >> { %807 = vsyncadd %s538_s21, 4294967280  ;;  %s329_s10 = sadd.s32 1, %s834_s10  }
  0xeb   : >> { %p326_p12 = scmp.ge.s32.totalorder %s329_s10, 8  }
  0xec   : > { %v338_v18 = vld [vmem:[#allocation2] sm:$0xff] (%p326_p12)  ;;  %v339_v19 = vld [vmem:[#allocation3] sm:$0xff] (%p326_p12)  ;;  %s612_s13 = sshll.u32 (%p326_p12), %s914_s17, 7  ;;  %s1084_s20 = scalar_lea.vmem (%p326_p12), [#allocation8], %s945_s26 }
  0xed   : > { %328 = sbr.rel (!%p326_p12) target bundleno = 230 (0xe6), region = 163  ;;  %v340_v20 = vadd.f32 (%p326_p12), %v339_v19, %v338_v18  ;;  %v609_v31 = vld [vmem:[%s1064_s6] ss:$0 sm:$0xff] (%p326_p12)  ;;  %s385_s25 = sshll.u32 (%p326_p12), %s1084_s20, 4  ;;  %s1015_s25 = int_to_ptr.vmem [resolvable:$true] %s385_s25 }
  0xee   : > { %v610_v33 = vld [vmem:[%s1065_s7] ss:$0 sm:$0xff] (%p326_p12)  ;;  %s1013_s5 = scalar_lea.hbm (%p326_p12), %s1066_s8, %s612_s13  ;;  %s1085_s15 = smov (%p326_p12), %s1084_s20 }
  0xef   : > { %v341_v21 = vadd.f32 (%p326_p12), %v340_v20, %v318_v17  ;;  %s1086_s19 = sand.u32 (%p326_p12), 1, %s818_s14   ;;  %s750_s24 = scalar_lea.vmem (%p326_p12), %s1015_s25, 128 }
  0xf0   : > { %s372_s22 = scalar_lea.sflag (%p326_p12), [#allocation9], %s1086_s19  ;;  %p751_p13 = scmp.ne.s32.totalorder (%p326_p12), %s1015_s25, %s750_s24 }
  0xf1   : > { %342 = vadd.xlane.f32.xlu0 (%p326_p12), %v341_v21  ;;  %s841_s17 = smov (%p326_p12), [#allocation8]  }
  0xf2   : > { %p752_p0 = pnand (%p326_p12), %p751_p13, %p931_p1  ;;  %s754_s11 = sshll.u32 (%p326_p12), %s841_s17, 4  ;;  %s755_s11 = int_to_ptr.vmem [resolvable:$false] %s754_s11 }
  0xf3   : > { %s756_s12 = scalar_lea.vmem (%p326_p12), %s755_s11, 256  ;;  %p757_p4 = scmp.lt.s32.totalorder (%p326_p12), %s1015_s25, %s755_s11 }
  0xf4   : > { %p753_p3 = pneg %p752_p0  ;;  %p758_p5 = scmp.lt.s32.totalorder %s756_s12, %s750_s24 }
  0xf6   : > { %p759_p6 = por %p758_p5, %p757_p4 }
  0xf8   : > { %p760_p7 = pnand %p759_p6, %p753_p3 }
 0x17e   : > { %v343_v22 = vpop.xlane.xlu0 %342 }
 0x17f   : > { %v344_v23 = vmul.f32 0.03125, %v343_v22 }
 0x181   : > { %v345_v24 = vsub.f32 %v341_v21, %v344_v23 }
 0x183   : > { %v346_v25 = vmul.f32 %v608_v9, %v345_v24 }
 0x185   : > { %v347_v26 = vmul.f32 %v346_v25, %v346_v25 }
 0x187   : > { %348 = vadd.xlane.f32.xlu0 %v347_v26 }
 0x214   : > { %v349_v27 = vpop.xlane.xlu0 %348 }
 0x215   : > { %v350_v28 = vmul.f32 0.03125, %v349_v27 }
 0x217   : > { %v351_v29 = vadd.f32 1e-12, %v350_v28 }
 0x219   : > { %700 = vrsqrt.f32 %v351_v29 }
 0x223   : > { %v701_v30 = vpop.eup %700 }
 0x224   : > { %v353_v32 = vmul.f32 %v701_v30, %v346_v25 }
 0x226   : > { %v361_v34 = vmul.f32 %v609_v31, %v353_v32 }
 0x228   : > { %v369_v35 = vadd.f32 %v610_v33, %v361_v34 }
 0x22a   : > { %370 = vst [vmem:[%s1085_s15] sm:$0xff] %v369_v35 }
 0x22b   : > { %763 = shalt.err (!%p760_p7)
}
 0x22c   : > { %s764_s26 = scalar_lea.hbm %s1013_s5, 128  ;;  %s768_s21 = scalar_lea.hbm %s1066_s8, 256 }
 0x22d   : > { %p765_p8 = scmp.ne.s32.totalorder %s1013_s5, %s764_s26  ;;  %p769_p11 = scmp.lt.u32.totalorder %s1013_s5, %s1066_s8 }
 0x22e   : > { %p770_p12 = scmp.lt.u32.totalorder %s768_s21, %s764_s26  ;;  %p772_p0 = scmp.lt.u32.totalorder %s764_s26, %s1013_s5 }
 0x22f   : > { %p766_p9 = pnand %p765_p8, %p931_p1 }
 0x230   : > { %p771_p13 = por %p770_p12, %p769_p11 }
 0x231   : > { %p767_p10 = pneg %p766_p9 }
 0x232   : > { %p773_p3 = por %p772_p0, %p771_p13 }
 0x234   : > { %p774_p4 = pnand %p773_p3, %p767_p10 }
 0x236   : > { %777 = shalt.err (!%p774_p4)
}
 0x237   : > { %635 = dma.vmem_to_hbm [thread:$0]  (%p931_p1), %s1015_s25, 128, %s1013_s5, %s372_s22  }
 0x238 PF: > { %p641_p5 = scmp.ge.s32.totalorder %s826_s16, 2  ;;  %s397_s9 = sand.u32 1, %s814_s1  }
 0x239   : > { %s398_s13 = scalar_lea.sflag [#allocation9], %s397_s9 }
 0x23a   : > { %p638_p6 = pnand %p641_p5, %p935_p2 }
 0x23c   : > { %809 = dma.done.wait (!%p638_p6), %s398_s13, 128  }
 0x23d   : > { %811 = vsyncadd (!%p638_p6), %s398_s13, 4294967168  ;;  %s1088_s16 = sld [smem:[#allocation20_spill]]  ;;  %s1089_s20 = sld [smem:[#allocation19_spill]] }
 0x23e   : > { %s1090_s15 = sld [smem:[#allocation21_spill]]  ;;  %s1091_s1 = smov %s818_s14 }
 0x243   : > { %p28_p7 = scmp.ge.s32.totalorder %s1088_s16, 4   ;;  %s1092_s14 = smov %s1089_s20 }
 0x245   :  { %30 = sbr.rel (!%p28_p7) target bundleno = 29 (0x1d), region = 174 }
 0x24c   :  { %403 = vsyncpa [#allocation9], 1 }
 0x24d   :  { %405 = vsyncpa [#allocation9 + $0x1], 1 }
 0x24e   :  { %406 = vsyncmov [#allocation4] }
 0x251   :  { %s407_s23 = vpop.sfrf %406 }
 0x252   :  { %p615_p1 = scmp.ne.s32.totalorder %s407_s23, 0 }
 0x254   :  { %411 = shalt.err (%p615_p1)  }
 0x255   :  { %413 = vsyncmov [#allocation4 + $0x1] }
 0x258   :  { %s414_s25 = vpop.sfrf %413 }
 0x259   :  { %p616_p2 = scmp.ne.s32.totalorder %s414_s25, 0 }
 0x25b   :  { %418 = shalt.err (%p616_p2)  }
 0x25c   :  { %420 = vsyncmov [#allocation4 + $0x2] }
 0x25f   :  { %s421_s27 = vpop.sfrf %420 }
 0x260   :  { %p617_p8 = scmp.ne.s32.totalorder %s421_s27, 0 }
 0x262   :  { %425 = shalt.err (%p617_p8)  }
 0x263   :  { %427 = vsyncmov [#allocation4 + $0x3] }
 0x266   :  { %s428_s0 = vpop.sfrf %427 }
 0x267   :  { %p618_p9 = scmp.ne.s32.totalorder %s428_s0, 0 }
 0x269   :  { %432 = shalt.err (%p618_p9)  }
 0x26a   :  { %434 = vsyncmov [#allocation4 + $0x4] }
 0x26d   :  { %s435_s16 = vpop.sfrf %434 }
 0x26e   :  { %p619_p10 = scmp.ne.s32.totalorder %s435_s16, 0 }
 0x270   :  { %439 = shalt.err (%p619_p10)  }
 0x271   :  { %441 = vsyncmov [#allocation4 + $0x5] }
 0x274   :  { %s442_s2 = vpop.sfrf %441 }
 0x275   :  { %p620_p11 = scmp.ne.s32.totalorder %s442_s2, 0 }
 0x277   :  { %446 = shalt.err (%p620_p11)  }
 0x278   :  { %448 = vsyncmov [#allocation4 + $0x6] }
 0x27b   :  { %s449_s3 = vpop.sfrf %448 }
 0x27c   :  { %p621_p12 = scmp.ne.s32.totalorder %s449_s3, 0 }
 0x27e   :  { %453 = shalt.err (%p621_p12)  }
 0x27f   :  { %455 = vsyncmov [#allocation4 + $0x7] }
 0x282   :  { %s456_s4 = vpop.sfrf %455 }
 0x283   :  { %p622_p13 = scmp.ne.s32.totalorder %s456_s4, 0 }
 0x285   :  { %460 = shalt.err (%p622_p13)  }
 0x286   :  { %462 = vsyncmov [#allocation4 + $0x8] }
 0x289   :  { %s463_s6 = vpop.sfrf %462 }
 0x28a   :  { %p623_p0 = scmp.ne.s32.totalorder %s463_s6, 0 }
 0x28c   :  { %467 = shalt.err (%p623_p0)  }
 0x28d   :  { %469 = vsyncmov [#allocation4 + $0x9] }
 0x290   :  { %s470_s7 = vpop.sfrf %469 }
 0x291   :  { %p624_p3 = scmp.ne.s32.totalorder %s470_s7, 0 }
 0x293   :  { %474 = shalt.err (%p624_p3)  }
 0x294   :  { %476 = vsyncmov [#allocation4 + $0xa] }
 0x297   :  { %s477_s8 = vpop.sfrf %476 }
 0x298   :  { %p625_p4 = scmp.ne.s32.totalorder %s477_s8, 0 }
 0x29a   :  { %481 = shalt.err (%p625_p4)  }
 0x29b   :  { %483 = vsyncmov [#allocation4 + $0xb] }
 0x29e   :  { %s484_s1 = vpop.sfrf %483 }
 0x29f   :  { %p626_p5 = scmp.ne.s32.totalorder %s484_s1, 0 }
 0x2a1   :  { %488 = shalt.err (%p626_p5)  }
 0x2a2   :  { %490 = vsyncmov [#allocation4 + $0xc] }
 0x2a5   :  { %s491_s14 = vpop.sfrf %490 }
 0x2a6   :  { %p627_p6 = scmp.ne.s32.totalorder %s491_s14, 0 }
 0x2a8   :  { %495 = shalt.err (%p627_p6)  }
 0x2a9   :  { %497 = vsyncmov [#allocation4 + $0xd] }
 0x2ac   :  { %s498_s5 = vpop.sfrf %497 }
 0x2ad   :  { %p628_p7 = scmp.ne.s32.totalorder %s498_s5, 0 }
 0x2af   :  { %502 = shalt.err (%p628_p7)  }
 0x2b0   :  { %504 = vsyncmov [#allocation4 + $0xe] }
 0x2b3   :  { %s505_s15 = vpop.sfrf %504 }
 0x2b4   :  { %p629_p1 = scmp.ne.s32.totalorder %s505_s15, 0 }
 0x2b6   :  { %509 = shalt.err (%p629_p1)  }
 0x2b7   :  { %511 = vsyncmov [#allocation4 + $0xf] }
 0x2ba   :  { %s512_s19 = vpop.sfrf %511 }
 0x2bb   :  { %p630_p2 = scmp.ne.s32.totalorder %s512_s19, 0 }
 0x2bd   :  { %516 = shalt.err (%p630_p2)  }

</bundles_post_ra>
